<compile_context>
chip_gen: v7x
topology: tpu7x:2x2x1
jax: 0.10.0
libtpu: 0.0.40
codegen_flags: <defaults>
</compile_context>

<pallas_src>
import jax
import jax.numpy as jnp
from jax.experimental import pallas as pl
from jax.experimental.pallas import tpu as pltpu

# ------------------------- problem sizes (static) -------------------------
N = 2
C1 = 32                    # CoordAtt in CoAC3 requires c1 == c2
C2 = 32
C_ = C2 // 2               # hidden channels (e = 0.5) = 16
MIP = max(8, C1 // 32)     # CoordAtt bottleneck channels = 8
H = 8
W = 8
HW = H * W
NHW = N * HW               # 128 -> exactly one lane width
NH = N * H                 # 16
NW = N * W                 # 16
BN_EPS = 1e-5

# -------- weight/bias slab layout (row offsets into a [R_WSLAB, 128] slab) --------
O_WCV12 = 0      # [2*C_, C1]     fused cv1|cv2 weight (cols 0:32)
O_BCV12 = 32     # [2*C_, NHW]    fused cv1|cv2 bias, pre-broadcast
O_WB1   = 64     # [C_, C_]       bottleneck cv1 weight (cols 0:16)
O_BB1   = 80     # [C_, NHW]
O_BB2   = 96     # [C_, NHW]
O_WCV3  = 112    # [C2, 2*C_]     cv3 weight (cols 0:32)
O_BCV3  = 144    # [C2, NHW]
O_WC1   = 176    # [MIP, C2]      CoordAtt conv1 (cols 0:32)
O_BC1   = 184    # [MIP, NH+NW]
O_WCH   = 192    # [C2, MIP]      CoordAtt conv_h (cols 0:8)
O_BCH   = 224    # [C2, NH]
O_WCW   = 256    # [C2, MIP]      CoordAtt conv_w (cols 0:8)
O_BCW   = 288    # [C2, NW]
R_WSLAB = 320

# -------- constant slab layout (shape-only, built once at import) --------
O_MSK  = 0       # 9 blocks of [C_, NHW] 3x3-tap validity masks (pre-broadcast)
O_EH   = 144     # [NH, NHW]  broadcast-over-W matrix
O_EW   = 160     # [NW, NHW]  broadcast-over-H matrix
O_POOL = 176     # [NHW, NH+NW]  (mean over W | mean over H) pooling matrix
R_CSLAB = 304


# ------------------------------ Pallas kernel ------------------------------
def coac3_kernel(x_ref, w_ref, wb2_ref, c_ref, o_ref):
    f32 = jnp.float32

    def mm(a, b):
        return jnp.dot(a, b, preferred_element_type=f32)

    def silu(v):
        return v * jax.nn.sigmoid(v)

    def hswish(v):
        return v * jnp.clip(v + 3.0, 0.0, 6.0) * (1.0 / 6.0)

    x = x_ref[...]                                                       # [C1, NHW]

    # ---- cv1 + cv2 fused: one matmul, one bias add, one SiLU ----
    ab = silu(mm(w_ref[O_WCV12:O_WCV12 + 2 * C_, 0:C1], x)
              + w_ref[O_BCV12:O_BCV12 + 2 * C_, :])                      # [2C_, NHW]
    a = ab[0:C_, :]
    b = ab[C_:2 * C_, :]

    # ---- Bottleneck cv1 (1x1) ----
    t = silu(mm(w_ref[O_WB1:O_WB1 + C_, 0:C_], a)
             + w_ref[O_BB1:O_BB1 + C_, :])                               # [C_, NHW]

    # ---- Bottleneck cv2 (3x3, pad=1) as ONE stacked matmul ----
    # src = 9 rolled+masked copies of t stacked on sublanes -> [9*C_, NHW],
    # weight [C_, 9*C_]; accumulation happens inside the MXU.
    taps = []
    k = 0
    for dy in (-1, 0, 1):
        for dx in (-1, 0, 1):
            off = dy * W + dx
            if off == 0:
                taps.append(t)                                           # center tap
            else:
                msk = c_ref[O_MSK + k * C_:O_MSK + (k + 1) * C_, :]      # [C_, NHW]
                taps.append(pltpu.roll(t, shift=(-off) % NHW, axis=1) * msk)
            k += 1
    src = jnp.concatenate(taps, axis=0)                                  # [9*C_, NHW]
    u = silu(mm(wb2_ref[...], src) + w_ref[O_BB2:O_BB2 + C_, :])         # [C_, NHW]
    m = a + u

    # ---- cv3 on channel-concat([m, b]): one matmul with the unsplit weight ----
    mb = jnp.concatenate([m, b], axis=0)                                 # [2C_, NHW]
    y = silu(mm(w_ref[O_WCV3:O_WCV3 + C2, 0:2 * C_], mb)
             + w_ref[O_BCV3:O_BCV3 + C2, :])                             # [C2, NHW]

    # ---- CoordAtt: fused (mean_W | mean_H) pooling + shared conv1 ----
    pooled = mm(y, c_ref[O_POOL:O_POOL + NHW, 0:NH + NW])                # [C2, NH+NW]
    z = hswish(mm(w_ref[O_WC1:O_WC1 + MIP, 0:C2], pooled)
               + w_ref[O_BC1:O_BC1 + MIP, 0:NH + NW])                    # [MIP, NH+NW]
    zh = z[:, 0:NH]
    zw = z[:, NH:NH + NW]
    ah = jax.nn.sigmoid(mm(w_ref[O_WCH:O_WCH + C2, 0:MIP], zh)
                        + w_ref[O_BCH:O_BCH + C2, 0:NH])                 # [C2, NH]
    aw = jax.nn.sigmoid(mm(w_ref[O_WCW:O_WCW + C2, 0:MIP], zw)
                        + w_ref[O_BCW:O_BCW + C2, 0:NW])                 # [C2, NW]
    ah_full = mm(ah, c_ref[O_EH:O_EH + NH, :])                           # [C2, NHW]
    aw_full = mm(aw, c_ref[O_EW:O_EW + NW, :])                           # [C2, NHW]

    o_ref[...] = (y * ah_full * aw_full).astype(o_ref.dtype)


# ------------------- shape-only constants (built once at import) -------------------
def _build_const_slab():
    lane = jnp.arange(NHW)                 # l = n*HW + y*W + x
    yy = (lane % HW) // W
    xx = lane % W
    nn = lane // HW

    cs = jnp.zeros((R_CSLAB, NHW), jnp.float32)
    k = 0
    for dy in (-1, 0, 1):
        for dx in (-1, 0, 1):
            valid = ((yy + dy >= 0) & (yy + dy < H) &
                     (xx + dx >= 0) & (xx + dx < W)).astype(jnp.float32)
            cs = cs.at[O_MSK + k * C_:O_MSK + (k + 1) * C_, :].set(
                jnp.broadcast_to(valid[None, :], (C_, NHW)))
            k += 1

    jh = nn * H + yy                       # column id for "mean over W" pooling
    jw = nn * W + xx                       # column id for "mean over H" pooling
    ph_mat = (jh[:, None] == jnp.arange(NH)[None, :]).astype(jnp.float32) / W   # [NHW, NH]
    pw_mat = (jw[:, None] == jnp.arange(NW)[None, :]).astype(jnp.float32) / H   # [NHW, NW]
    cs = cs.at[O_EH:O_EH + NH, :].set(jnp.transpose(ph_mat) * W)                # [NH, NHW]
    cs = cs.at[O_EW:O_EW + NW, :].set(jnp.transpose(pw_mat) * H)                # [NW, NHW]
    cs = cs.at[O_POOL:O_POOL + NHW, 0:NH].set(ph_mat)
    cs = cs.at[O_POOL:O_POOL + NHW, NH:NH + NW].set(pw_mat)
    return cs


_CONST_SLAB = _build_const_slab()


# ------------------------------ wrapper -------------------------------------
def _fold_bn(w, bn, conv_bias=None):
    """Fold eval-mode BatchNorm into a preceding conv (weight [O, I] or [O, I, 3, 3])."""
    gamma, beta, mean, var = bn
    s = gamma / jnp.sqrt(var + BN_EPS)
    wf = w * (s[:, None] if w.ndim == 2 else s[:, None, None, None])
    b0 = conv_bias if conv_bias is not None else 0.0
    bf = s * (b0 - mean) + beta
    return wf.astype(jnp.float32), bf.reshape(-1, 1).astype(jnp.float32)


def _pack_params(p):
    wcv1, bcv1 = _fold_bn(p["w_cv1"], p["bn_cv1"])
    wcv2, bcv2 = _fold_bn(p["w_cv2"], p["bn_cv2"])
    wb1, bb1 = _fold_bn(p["w_b1"], p["bn_b1"])
    wb2, bb2 = _fold_bn(p["w_b2"], p["bn_b2"])                 # [C_, C_, 3, 3]
    wcv3, bcv3 = _fold_bn(p["w_cv3"], p["bn_cv3"])
    wc1, bc1 = _fold_bn(p["w_c1"], p["bn_c1"], conv_bias=p["b_c1"])
    wch = p["w_ch"].astype(jnp.float32)
    bch = p["b_ch"].astype(jnp.float32)[:, None]
    wcw = p["w_cw"].astype(jnp.float32)
    bcw = p["b_cw"].astype(jnp.float32)[:, None]

    ws = jnp.zeros((R_WSLAB, NHW), jnp.float32)
    ws = ws.at[O_WCV12:O_WCV12 + 2 * C_, 0:C1].set(jnp.concatenate([wcv1, wcv2], axis=0))
    ws = ws.at[O_BCV12:O_BCV12 + 2 * C_, :].set(
        jnp.broadcast_to(jnp.concatenate([bcv1, bcv2], axis=0), (2 * C_, NHW)))
    ws = ws.at[O_WB1:O_WB1 + C_, 0:C_].set(wb1)
    ws = ws.at[O_BB1:O_BB1 + C_, :].set(jnp.broadcast_to(bb1, (C_, NHW)))
    ws = ws.at[O_BB2:O_BB2 + C_, :].set(jnp.broadcast_to(bb2, (C_, NHW)))
    ws = ws.at[O_WCV3:O_WCV3 + C2, 0:2 * C_].set(wcv3)
    ws = ws.at[O_BCV3:O_BCV3 + C2, :].set(jnp.broadcast_to(bcv3, (C2, NHW)))
    ws = ws.at[O_WC1:O_WC1 + MIP, 0:C2].set(wc1)
    ws = ws.at[O_BC1:O_BC1 + MIP, 0:NH + NW].set(jnp.broadcast_to(bc1, (MIP, NH + NW)))
    ws = ws.at[O_WCH:O_WCH + C2, 0:MIP].set(wch)
    ws = ws.at[O_BCH:O_BCH + C2, 0:NH].set(jnp.broadcast_to(bch, (C2, NH)))
    ws = ws.at[O_WCW:O_WCW + C2, 0:MIP].set(wcw)
    ws = ws.at[O_BCW:O_BCW + C2, 0:NW].set(jnp.broadcast_to(bcw, (C2, NW)))

    # stacked 3x3 weight: wb2s[o, k*C_ + i] = wb2[o, i, kh, kw], k = kh*3 + kw
    wb2s = jnp.transpose(wb2, (0, 2, 3, 1)).reshape(C_, 9 * C_)
    return ws, wb2s


@jax.jit
def coac3_forward(x_nchw, p):
    n, c, h, w = x_nchw.shape
    assert (n, c, h, w) == (N, C1, H, W)

    ws, wb2s = _pack_params(p)
    # layout: NCHW -> [C1, N*H*W] (channels on sublanes, lane-dense spatial)
    x2d = jnp.transpose(x_nchw, (1, 0, 2, 3)).reshape(C1, NHW).astype(jnp.float32)

    out2d = pl.pallas_call(
        coac3_kernel,
        out_shape=jax.ShapeDtypeStruct((C2, NHW), jnp.float32),
        in_specs=[pl.BlockSpec(memory_space=pltpu.MemorySpace.VMEM)] * 4,
        out_specs=pl.BlockSpec(memory_space=pltpu.MemorySpace.VMEM),
    )(x2d, ws, wb2s, _CONST_SLAB)

    # [C2, N*H*W] -> NCHW
    return jnp.transpose(out2d.reshape(C2, N, H, W), (1, 0, 2, 3))


# ------------------------- pure-JAX reference (for checking) ----------------
def _conv2d(x, w, padding=0, bias=None):
    out = jax.lax.conv_general_dilated(
        x, w, window_strides=(1, 1),
        padding=[(padding, padding), (padding, padding)],
        dimension_numbers=("NCHW", "OIHW", "NCHW"))
    if bias is not None:
        out = out + bias[None, :, None, None]
    return out


def _bn(x, bn):
    gamma, beta, mean, var = bn
    scale = gamma * jax.lax.rsqrt(var + BN_EPS)
    return (x - mean[None, :, None, None]) * scale[None, :, None, None] + beta[None, :, None, None]


def reference(x, p):
    silu = lambda v: v * jax.nn.sigmoid(v)
    c4 = lambda w2: w2[:, :, None, None]

    a = silu(_bn(_conv2d(x, c4(p["w_cv1"])), p["bn_cv1"]))
    b = silu(_bn(_conv2d(x, c4(p["w_cv2"])), p["bn_cv2"]))
    t = silu(_bn(_conv2d(a, c4(p["w_b1"])), p["bn_b1"]))
    u = silu(_bn(_conv2d(t, p["w_b2"], padding=1), p["bn_b2"]))
    m = a + u
    y = silu(_bn(_conv2d(jnp.concatenate([m, b], axis=1), c4(p["w_cv3"])), p["bn_cv3"]))

    # CoordAtt
    x_h = jnp.mean(y, axis=3, keepdims=True)                                  # [N,C,H,1]
    x_w = jnp.transpose(jnp.mean(y, axis=2, keepdims=True), (0, 1, 3, 2))     # [N,C,W,1]
    z = jnp.concatenate([x_h, x_w], axis=2)                                   # [N,C,H+W,1]
    z = _bn(_conv2d(z, c4(p["w_c1"]), bias=p["b_c1"]), p["bn_c1"])
    z = z * jnp.clip(z + 3.0, 0.0, 6.0) / 6.0                                 # h_swish
    z_h, z_w = z[:, :, :H, :], z[:, :, H:, :]
    z_w = jnp.transpose(z_w, (0, 1, 3, 2))                                    # [N,mip,1,W]
    a_h = jax.nn.sigmoid(_conv2d(z_h, c4(p["w_ch"]), bias=p["b_ch"]))         # [N,C2,H,1]
    a_w = jax.nn.sigmoid(_conv2d(z_w, c4(p["w_cw"]), bias=p["b_cw"]))         # [N,C2,1,W]
    return y * a_w * a_h


# ------------------------------ main ----------------------------------------
if __name__ == "__main__":
    key = jax.random.PRNGKey(0)
    keys = jax.random.split(key, 48)
    ki = iter(keys)

    def conv_w(shape):
        fan_in = 1
        for d in shape[1:]:
            fan_in *= d
        bound = (1.0 / fan_in) ** 0.5
        return jax.random.uniform(next(ki), shape, jnp.float32, -bound, bound)

    def bn_params(cch):
        return (1.0 + 0.1 * jax.random.normal(next(ki), (cch,), jnp.float32),   # gamma
                0.1 * jax.random.normal(next(ki), (cch,), jnp.float32),         # beta
                0.1 * jax.random.normal(next(ki), (cch,), jnp.float32),         # running mean
                jax.random.uniform(next(ki), (cch,), jnp.float32, 0.5, 1.5))    # running var

    p = {
        "w_cv1": conv_w((C_, C1)),        "bn_cv1": bn_params(C_),
        "w_cv2": conv_w((C_, C1)),        "bn_cv2": bn_params(C_),
        "w_b1":  conv_w((C_, C_)),        "bn_b1":  bn_params(C_),
        "w_b2":  conv_w((C_, C_, 3, 3)),  "bn_b2":  bn_params(C_),
        "w_cv3": conv_w((C2, 2 * C_)),    "bn_cv3": bn_params(C2),
        "w_c1":  conv_w((MIP, C2)),
        "b_c1":  0.1 * jax.random.normal(next(ki), (MIP,), jnp.float32),
        "bn_c1": bn_params(MIP),
        "w_ch":  conv_w((C2, MIP)),
        "b_ch":  0.1 * jax.random.normal(next(ki), (C2,), jnp.float32),
        "w_cw":  conv_w((C2, MIP)),
        "b_cw":  0.1 * jax.random.normal(next(ki), (C2,), jnp.float32),
    }

    x = jax.random.normal(next(ki), (N, C1, H, W), dtype=jnp.float32)

    out = coac3_forward(x, p)
    out = jax.block_until_ready(out)

    ref = reference(x, p)
    assert out.shape == (N, C2, H, W)
    assert jnp.allclose(out, ref, atol=1e-4, rtol=1e-4), "mismatch vs reference"

    print("KERNEL_OK")
</pallas_src>

<mosaic_0001>
module attributes {stable_mosaic.version = 11 : i64} {
  func.func @coac3_kernel(%arg0: memref<32x128xf32, #tpu.memory_space<vmem>>, %arg1: memref<320x128xf32, #tpu.memory_space<vmem>>, %arg2: memref<16x144xf32, #tpu.memory_space<vmem>>, %arg3: memref<304x128xf32, #tpu.memory_space<vmem>>, %arg4: memref<32x128xf32, #tpu.memory_space<vmem>>) attributes {dimension_semantics = [], scalar_prefetch = 0 : i64, scratch_operands = 0 : i64, tpu.core_type = #tpu.core_type<tc>} {
    %c0 = arith.constant 0 : index
    %c0_0 = arith.constant 0 : index
    %0 = vector.load %arg0[%c0, %c0_0] : memref<32x128xf32, #tpu.memory_space<vmem>>, vector<32x128xf32>
    %c0_1 = arith.constant 0 : index
    %c0_2 = arith.constant 0 : index
    %1 = vector.load %arg1[%c0_1, %c0_2] : memref<320x128xf32, #tpu.memory_space<vmem>>, vector<32x32xf32>
    %cst = arith.constant dense<0.000000e+00> : vector<32x128xf32>
    %2 = tpu.matmul %1, %0, %cst {dimension_numbers = #tpu.dot_dimension_numbers<[1], [0], [0], [1], [0, 0, 1, 1], [], []>} : vector<32x32xf32>, vector<32x128xf32>, vector<32x128xf32> -> vector<32x128xf32>
    %c32 = arith.constant 32 : index
    %c0_3 = arith.constant 0 : index
    %3 = vector.load %arg1[%c32, %c0_3] : memref<320x128xf32, #tpu.memory_space<vmem>>, vector<32x128xf32>
    %4 = arith.addf %2, %3 : vector<32x128xf32>
    %5 = arith.negf %4 : vector<32x128xf32>
    %6 = math.exp %5 : vector<32x128xf32>
    %cst_4 = arith.constant 1.000000e+00 : f32
    %7 = vector.broadcast %cst_4 : f32 to vector<32x128xf32>
    %8 = arith.addf %7, %6 : vector<32x128xf32>
    %9 = arith.divf %7, %8 : vector<32x128xf32>
    %10 = arith.mulf %4, %9 : vector<32x128xf32>
    %11 = vector.extract_strided_slice %10 {offsets = [0, 0], sizes = [16, 128], strides = [1, 1]} : vector<32x128xf32> to vector<16x128xf32>
    %12 = vector.extract_strided_slice %10 {offsets = [16, 0], sizes = [16, 128], strides = [1, 1]} : vector<32x128xf32> to vector<16x128xf32>
    %c64 = arith.constant 64 : index
    %c0_5 = arith.constant 0 : index
    %13 = vector.load %arg1[%c64, %c0_5] : memref<320x128xf32, #tpu.memory_space<vmem>>, vector<16x16xf32>
    %cst_6 = arith.constant dense<0.000000e+00> : vector<16x128xf32>
    %14 = tpu.matmul %13, %11, %cst_6 {dimension_numbers = #tpu.dot_dimension_numbers<[1], [0], [0], [1], [0, 0, 1, 1], [], []>} : vector<16x16xf32>, vector<16x128xf32>, vector<16x128xf32> -> vector<16x128xf32>
    %c80 = arith.constant 80 : index
    %c0_7 = arith.constant 0 : index
    %15 = vector.load %arg1[%c80, %c0_7] : memref<320x128xf32, #tpu.memory_space<vmem>>, vector<16x128xf32>
    %16 = arith.addf %14, %15 : vector<16x128xf32>
    %17 = arith.negf %16 : vector<16x128xf32>
    %18 = math.exp %17 : vector<16x128xf32>
    %cst_8 = arith.constant 1.000000e+00 : f32
    %19 = vector.broadcast %cst_8 : f32 to vector<16x128xf32>
    %20 = arith.addf %19, %18 : vector<16x128xf32>
    %21 = arith.divf %19, %20 : vector<16x128xf32>
    %22 = arith.mulf %16, %21 : vector<16x128xf32>
    %c0_9 = arith.constant 0 : index
    %c0_10 = arith.constant 0 : index
    %23 = vector.load %arg3[%c0_9, %c0_10] : memref<304x128xf32, #tpu.memory_space<vmem>>, vector<16x128xf32>
    %c9_i32 = arith.constant 9 : i32
    %24 = tpu.dynamic_rotate %22 by %c9_i32 dim 1 : vector<16x128xf32>, i32 -> vector<16x128xf32>
    %25 = arith.mulf %24, %23 : vector<16x128xf32>
    %c16 = arith.constant 16 : index
    %c0_11 = arith.constant 0 : index
    %26 = vector.load %arg3[%c16, %c0_11] : memref<304x128xf32, #tpu.memory_space<vmem>>, vector<16x128xf32>
    %c8_i32 = arith.constant 8 : i32
    %27 = tpu.dynamic_rotate %22 by %c8_i32 dim 1 : vector<16x128xf32>, i32 -> vector<16x128xf32>
    %28 = arith.mulf %27, %26 : vector<16x128xf32>
    %c32_12 = arith.constant 32 : index
    %c0_13 = arith.constant 0 : index
    %29 = vector.load %arg3[%c32_12, %c0_13] : memref<304x128xf32, #tpu.memory_space<vmem>>, vector<16x128xf32>
    %c7_i32 = arith.constant 7 : i32
    %30 = tpu.dynamic_rotate %22 by %c7_i32 dim 1 : vector<16x128xf32>, i32 -> vector<16x128xf32>
    %31 = arith.mulf %30, %29 : vector<16x128xf32>
    %c48 = arith.constant 48 : index
    %c0_14 = arith.constant 0 : index
    %32 = vector.load %arg3[%c48, %c0_14] : memref<304x128xf32, #tpu.memory_space<vmem>>, vector<16x128xf32>
    %c1_i32 = arith.constant 1 : i32
    %33 = tpu.dynamic_rotate %22 by %c1_i32 dim 1 : vector<16x128xf32>, i32 -> vector<16x128xf32>
    %34 = arith.mulf %33, %32 : vector<16x128xf32>
    %c80_15 = arith.constant 80 : index
    %c0_16 = arith.constant 0 : index
    %35 = vector.load %arg3[%c80_15, %c0_16] : memref<304x128xf32, #tpu.memory_space<vmem>>, vector<16x128xf32>
    %c127_i32 = arith.constant 127 : i32
    %36 = tpu.dynamic_rotate %22 by %c127_i32 dim 1 : vector<16x128xf32>, i32 -> vector<16x128xf32>
    %37 = arith.mulf %36, %35 : vector<16x128xf32>
    %c96 = arith.constant 96 : index
    %c0_17 = arith.constant 0 : index
    %38 = vector.load %arg3[%c96, %c0_17] : memref<304x128xf32, #tpu.memory_space<vmem>>, vector<16x128xf32>
    %c121_i32 = arith.constant 121 : i32
    %39 = tpu.dynamic_rotate %22 by %c121_i32 dim 1 : vector<16x128xf32>, i32 -> vector<16x128xf32>
    %40 = arith.mulf %39, %38 : vector<16x128xf32>
    %c112 = arith.constant 112 : index
    %c0_18 = arith.constant 0 : index
    %41 = vector.load %arg3[%c112, %c0_18] : memref<304x128xf32, #tpu.memory_space<vmem>>, vector<16x128xf32>
    %c120_i32 = arith.constant 120 : i32
    %42 = tpu.dynamic_rotate %22 by %c120_i32 dim 1 : vector<16x128xf32>, i32 -> vector<16x128xf32>
    %43 = arith.mulf %42, %41 : vector<16x128xf32>
    %c128 = arith.constant 128 : index
    %c0_19 = arith.constant 0 : index
    %44 = vector.load %arg3[%c128, %c0_19] : memref<304x128xf32, #tpu.memory_space<vmem>>, vector<16x128xf32>
    %c119_i32 = arith.constant 119 : i32
    %45 = tpu.dynamic_rotate %22 by %c119_i32 dim 1 : vector<16x128xf32>, i32 -> vector<16x128xf32>
    %46 = arith.mulf %45, %44 : vector<16x128xf32>
    %47 = tpu.concatenate %25, %28, %31, %34, %22, %37, %40, %43, %46 in 0 : vector<16x128xf32>, vector<16x128xf32>, vector<16x128xf32>, vector<16x128xf32>, vector<16x128xf32>, vector<16x128xf32>, vector<16x128xf32>, vector<16x128xf32>, vector<16x128xf32> -> vector<144x128xf32>
    %c0_20 = arith.constant 0 : index
    %c0_21 = arith.constant 0 : index
    %48 = vector.load %arg2[%c0_20, %c0_21] : memref<16x144xf32, #tpu.memory_space<vmem>>, vector<16x144xf32>
    %cst_22 = arith.constant dense<0.000000e+00> : vector<16x128xf32>
    %49 = tpu.matmul %48, %47, %cst_22 {dimension_numbers = #tpu.dot_dimension_numbers<[1], [0], [0], [1], [0, 0, 1, 1], [], []>} : vector<16x144xf32>, vector<144x128xf32>, vector<16x128xf32> -> vector<16x128xf32>
    %c96_23 = arith.constant 96 : index
    %c0_24 = arith.constant 0 : index
    %50 = vector.load %arg1[%c96_23, %c0_24] : memref<320x128xf32, #tpu.memory_space<vmem>>, vector<16x128xf32>
    %51 = arith.addf %49, %50 : vector<16x128xf32>
    %52 = arith.negf %51 : vector<16x128xf32>
    %53 = math.exp %52 : vector<16x128xf32>
    %cst_25 = arith.constant 1.000000e+00 : f32
    %54 = vector.broadcast %cst_25 : f32 to vector<16x128xf32>
    %55 = arith.addf %54, %53 : vector<16x128xf32>
    %56 = arith.divf %54, %55 : vector<16x128xf32>
    %57 = arith.mulf %51, %56 : vector<16x128xf32>
    %58 = arith.addf %11, %57 : vector<16x128xf32>
    %59 = tpu.concatenate %58, %12 in 0 : vector<16x128xf32>, vector<16x128xf32> -> vector<32x128xf32>
    %c112_26 = arith.constant 112 : index
    %c0_27 = arith.constant 0 : index
    %60 = vector.load %arg1[%c112_26, %c0_27] : memref<320x128xf32, #tpu.memory_space<vmem>>, vector<32x32xf32>
    %cst_28 = arith.constant dense<0.000000e+00> : vector<32x128xf32>
    %61 = tpu.matmul %60, %59, %cst_28 {dimension_numbers = #tpu.dot_dimension_numbers<[1], [0], [0], [1], [0, 0, 1, 1], [], []>} : vector<32x32xf32>, vector<32x128xf32>, vector<32x128xf32> -> vector<32x128xf32>
    %c144 = arith.constant 144 : index
    %c0_29 = arith.constant 0 : index
    %62 = vector.load %arg1[%c144, %c0_29] : memref<320x128xf32, #tpu.memory_space<vmem>>, vector<32x128xf32>
    %63 = arith.addf %61, %62 : vector<32x128xf32>
    %64 = arith.negf %63 : vector<32x128xf32>
    %65 = math.exp %64 : vector<32x128xf32>
    %cst_30 = arith.constant 1.000000e+00 : f32
    %66 = vector.broadcast %cst_30 : f32 to vector<32x128xf32>
    %67 = arith.addf %66, %65 : vector<32x128xf32>
    %68 = arith.divf %66, %67 : vector<32x128xf32>
    %69 = arith.mulf %63, %68 : vector<32x128xf32>
    %c176 = arith.constant 176 : index
    %c0_31 = arith.constant 0 : index
    %70 = vector.load %arg3[%c176, %c0_31] : memref<304x128xf32, #tpu.memory_space<vmem>>, vector<128x32xf32>
    %cst_32 = arith.constant dense<0.000000e+00> : vector<32x32xf32>
    %71 = tpu.matmul %69, %70, %cst_32 {dimension_numbers = #tpu.dot_dimension_numbers<[1], [0], [0], [1], [0, 0, 1, 1], [], []>} : vector<32x128xf32>, vector<128x32xf32>, vector<32x32xf32> -> vector<32x32xf32>
    %c176_33 = arith.constant 176 : index
    %c0_34 = arith.constant 0 : index
    %72 = vector.load %arg1[%c176_33, %c0_34] : memref<320x128xf32, #tpu.memory_space<vmem>>, vector<8x32xf32>
    %cst_35 = arith.constant dense<0.000000e+00> : vector<8x32xf32>
    %73 = tpu.matmul %72, %71, %cst_35 {dimension_numbers = #tpu.dot_dimension_numbers<[1], [0], [0], [1], [0, 0, 1, 1], [], []>} : vector<8x32xf32>, vector<32x32xf32>, vector<8x32xf32> -> vector<8x32xf32>
    %c184 = arith.constant 184 : index
    %c0_36 = arith.constant 0 : index
    %74 = vector.load %arg1[%c184, %c0_36] : memref<320x128xf32, #tpu.memory_space<vmem>>, vector<8x32xf32>
    %75 = arith.addf %73, %74 : vector<8x32xf32>
    %cst_37 = arith.constant 3.000000e+00 : f32
    %76 = vector.broadcast %cst_37 : f32 to vector<8x32xf32>
    %77 = arith.addf %75, %76 : vector<8x32xf32>
    %cst_38 = arith.constant 0.000000e+00 : f32
    %cst_39 = arith.constant 6.000000e+00 : f32
    %78 = vector.broadcast %cst_38 : f32 to vector<8x32xf32>
    %79 = arith.maximumf %78, %77 : vector<8x32xf32>
    %80 = vector.broadcast %cst_39 : f32 to vector<8x32xf32>
    %81 = arith.minimumf %80, %79 : vector<8x32xf32>
    %82 = arith.mulf %75, %81 : vector<8x32xf32>
    %cst_40 = arith.constant 0.166666672 : f32
    %83 = vector.broadcast %cst_40 : f32 to vector<8x32xf32>
    %84 = arith.mulf %82, %83 : vector<8x32xf32>
    %85 = vector.extract_strided_slice %84 {offsets = [0, 0], sizes = [8, 16], strides = [1, 1]} : vector<8x32xf32> to vector<8x16xf32>
    %86 = vector.extract_strided_slice %84 {offsets = [0, 16], sizes = [8, 16], strides = [1, 1]} : vector<8x32xf32> to vector<8x16xf32>
    %c192 = arith.constant 192 : index
    %c0_41 = arith.constant 0 : index
    %87 = vector.load %arg1[%c192, %c0_41] : memref<320x128xf32, #tpu.memory_space<vmem>>, vector<32x8xf32>
    %cst_42 = arith.constant dense<0.000000e+00> : vector<32x16xf32>
    %88 = tpu.matmul %87, %85, %cst_42 {dimension_numbers = #tpu.dot_dimension_numbers<[1], [0], [0], [1], [0, 0, 1, 1], [], []>} : vector<32x8xf32>, vector<8x16xf32>, vector<32x16xf32> -> vector<32x16xf32>
    %c224 = arith.constant 224 : index
    %c0_43 = arith.constant 0 : index
    %89 = vector.load %arg1[%c224, %c0_43] : memref<320x128xf32, #tpu.memory_space<vmem>>, vector<32x16xf32>
    %90 = arith.addf %88, %89 : vector<32x16xf32>
    %91 = arith.negf %90 : vector<32x16xf32>
    %92 = math.exp %91 : vector<32x16xf32>
    %cst_44 = arith.constant 1.000000e+00 : f32
    %93 = vector.broadcast %cst_44 : f32 to vector<32x16xf32>
    %94 = arith.addf %93, %92 : vector<32x16xf32>
    %95 = arith.divf %93, %94 : vector<32x16xf32>
    %c256 = arith.constant 256 : index
    %c0_45 = arith.constant 0 : index
    %96 = vector.load %arg1[%c256, %c0_45] : memref<320x128xf32, #tpu.memory_space<vmem>>, vector<32x8xf32>
    %cst_46 = arith.constant dense<0.000000e+00> : vector<32x16xf32>
    %97 = tpu.matmul %96, %86, %cst_46 {dimension_numbers = #tpu.dot_dimension_numbers<[1], [0], [0], [1], [0, 0, 1, 1], [], []>} : vector<32x8xf32>, vector<8x16xf32>, vector<32x16xf32> -> vector<32x16xf32>
    %c288 = arith.constant 288 : index
    %c0_47 = arith.constant 0 : index
    %98 = vector.load %arg1[%c288, %c0_47] : memref<320x128xf32, #tpu.memory_space<vmem>>, vector<32x16xf32>
    %99 = arith.addf %97, %98 : vector<32x16xf32>
    %100 = arith.negf %99 : vector<32x16xf32>
    %101 = math.exp %100 : vector<32x16xf32>
    %cst_48 = arith.constant 1.000000e+00 : f32
    %102 = vector.broadcast %cst_48 : f32 to vector<32x16xf32>
    %103 = arith.addf %102, %101 : vector<32x16xf32>
    %104 = arith.divf %102, %103 : vector<32x16xf32>
    %c144_49 = arith.constant 144 : index
    %c0_50 = arith.constant 0 : index
    %105 = vector.load %arg3[%c144_49, %c0_50] : memref<304x128xf32, #tpu.memory_space<vmem>>, vector<16x128xf32>
    %cst_51 = arith.constant dense<0.000000e+00> : vector<32x128xf32>
    %106 = tpu.matmul %95, %105, %cst_51 {dimension_numbers = #tpu.dot_dimension_numbers<[1], [0], [0], [1], [0, 0, 1, 1], [], []>} : vector<32x16xf32>, vector<16x128xf32>, vector<32x128xf32> -> vector<32x128xf32>
    %c160 = arith.constant 160 : index
    %c0_52 = arith.constant 0 : index
    %107 = vector.load %arg3[%c160, %c0_52] : memref<304x128xf32, #tpu.memory_space<vmem>>, vector<16x128xf32>
    %cst_53 = arith.constant dense<0.000000e+00> : vector<32x128xf32>
    %108 = tpu.matmul %104, %107, %cst_53 {dimension_numbers = #tpu.dot_dimension_numbers<[1], [0], [0], [1], [0, 0, 1, 1], [], []>} : vector<32x16xf32>, vector<16x128xf32>, vector<32x128xf32> -> vector<32x128xf32>
    %109 = arith.mulf %69, %106 : vector<32x128xf32>
    %110 = arith.mulf %109, %108 : vector<32x128xf32>
    %c0_54 = arith.constant 0 : index
    %c0_55 = arith.constant 0 : index
    %111 = vector.load %arg4[%c0_54, %c0_55] : memref<32x128xf32, #tpu.memory_space<vmem>>, vector<32x128xf32>
    tpu.vector_store %arg4[%c0_54, %c0_55], %110 {strides = array<i32>} : memref<32x128xf32, #tpu.memory_space<vmem>>, vector<32x128xf32>,
    return
  }
}

</mosaic_0001>

<bundles_post_ra>
// kernel: coac3_forward.1
= control target key start
LH: loop header
LB: loop body
LE: loop exit
PB: predicated region body
PF: predicated region fallthrough
CT: control target
= control target key end

     0   :  { %vm29_vm0 = vcmask 261120   ;;  %vm159_vm1 = vcmask 130048   ;;  %v1634_v39 = vmov 0.0|0.0   ;;  %s1635_s12 = smov 8   ;;  %s1636_s13 = smov 9   ;;  %vm1643_vm2 = vmmov 0   ;;  %s2024_s0 = inlined_call_operand.vmem [shape: f32[32,128], index: 0, kind: input, shape index: {}]   ;;  %s2025_s1 = inlined_call_operand.vmem [shape: f32[320,128], index: 1, kind: input, shape index: {}]   ;;  %s2026_s2 = inlined_call_operand.vmem [shape: f32[16,144], index: 2, kind: input, shape index: {}]   ;;  %s2027_s3 = inlined_call_operand.vmem [shape: f32[304,128], index: 3, kind: input, shape index: {}]   ;;  %s2028_s4 = inlined_call_operand.vmem [shape: f32[32,128], index: 4, kind: output, shape index: {}]  }
   0x1   :  { %v17_v0 = vld [vmem:[%s2024_s0] sm:$0xff]  ;;  %v18_v1 = vld [vmem:[%s2024_s0 + $0x8] sm:$0xff]  ;;  %v19_v2 = vld [vmem:[%s2024_s0 + $0x10] sm:$0xff]  ;;  %s1637_s14 = smov 7   ;;  %s1638_s17 = smov 1   ;;  %vm744_vm3 = vcmask 64512  }
   0x2   :  { %v1449_v3 = vpack.c.bf16 %v18_v1, %v17_v0  ;;  %v20_v4 = vld [vmem:[%s2024_s0 + $0x18] sm:$0xff]  ;;  %v21_v5 = vld [vmem:[%s2025_s1] sm:$0xff]  ;;  %v22_v7 = vld [vmem:[%s2025_s1 + $0x8] sm:$0xff]  ;;  %s1639_s20 = smov 127   ;;  %s1640_s21 = smov 121  }
   0x3   :  { %v1453_v6 = vpack.c.bf16 %v20_v4, %v19_v2  ;;  %1337 = vmatprep.mubr.msk.f32.mxu0 %vm29_vm0, %v21_v5  ;;  %v155_v8 = vld [vmem:[%s2025_s1 + $0x40] sm:$0xff]  ;;  %v26_v9 = vld [vmem:[%s2025_s1 + $0x28] sm:$0xff]  ;;  %v158_v27 = vld [vmem:[%s2025_s1 + $0x58] sm:$0xff]  ;;  %s1641_s22 = smov 120   ;;  %s1642_s23 = smov 119  }
   0x4   :  { %1450 = vmatprep.subr.bf16.mxu0 %v1449_v3  ;;  %1347 = vmatprep.mubr.msk.f32.mxu1 %vm159_vm1, %v155_v8  ;;  %v25_v10 = vld [vmem:[%s2025_s1 + $0x20] sm:$0xff]  ;;  %v156_v26 = vld [vmem:[%s2025_s1 + $0x48] sm:$0xff]  ;;  %v157_v28 = vld [vmem:[%s2025_s1 + $0x50] sm:$0xff]  ;;  %s1645_s19 = smov 112  }
   0x5   :  { %1452 = vmatpush3.bf16.msra.mxu0 %v1449_v3  ;;  %v23_v45 = vld [vmem:[%s2025_s1 + $0x10] sm:$0xff]  ;;  %v24_v46 = vld [vmem:[%s2025_s1 + $0x18] sm:$0xff]  ;;  %v320_v47 = vld [vmem:[%s2026_s2 + $0x8] sm:$0xff] }
   0x6   :  { %1454 = vmatprep.subr.bf16.mxu0 %v1453_v6  ;;  %v255_v50 = vld [vmem:[%s2027_s3] sm:$0xff]  ;;  %v256_v51 = vld [vmem:[%s2027_s3 + $0x8] sm:$0xff]  ;;  %v263_v53 = vld [vmem:[%s2027_s3 + $0x10] sm:$0xff] }
   0x7   :  { %v264_v57 = vld [vmem:[%s2027_s3 + $0x18] sm:$0xff]  ;;  %v272_v61 = vld [vmem:[%s2027_s3 + $0x28] sm:$0xff]  ;;  %v271_v62 = vld [vmem:[%s2027_s3 + $0x20] sm:$0xff] }
   0x8   :  { %v280_v5 = vld [vmem:[%s2027_s3 + $0x38] sm:$0xff] }
   0x9   :  { %1456 = vmatpush3.bf16.msra.mxu0 %v1453_v6  ;;  %v279_v6 = vld [vmem:[%s2027_s3 + $0x30] sm:$0xff] }
   0xc   :  { %1338 = vmatmul.mubr.msk.f32.vlgmr.msra.gmra.mrb[0].mxu0 %vm29_vm0, %v22_v7 }
   0xd   :  { %1340 = vmatprep.mubr.msk.f32.mxu0 %vm29_vm0, %v23_v45  ;;  %v321_v45 = vld [vmem:[%s2026_s2 + $0x10] sm:$0xff] }
  0x10   :  { %1341 = vmatmul.mubr.msk.f32.gmra.mrb[2].mxu0 %vm29_vm0, %v24_v46  ;;  %v28_v46 = vld [vmem:[%s2025_s1 + $0x38] sm:$0xff] }
  0xdf   :  { %v1339_v11 = vpop.f32.mrb[0].mxu0 }
  0xe0   :  { %v114_v12 = vadd.f32 %v1339_v11, %v26_v9  ;;  %v108_v13 = vpop.f32.mrb[1].mxu0 }
  0xe1   :  { %v109_v14 = vadd.f32 %v108_v13, %v25_v10 }
  0xe2   :  { %v1218_v15 = vmul.f32 -1.442695, %v114_v12 }
  0xe3   :  { %v1217_v16 = vmul.f32 -1.442695, %v109_v14 }
  0xe4   :  { %1554 = vpow2.f32 %v1218_v15  ;;  %v287_v15 = vld [vmem:[%s2027_s3 + $0x50] sm:$0xff] }
  0xe5   :  { %1556 = vpow2.f32 %v1217_v16 }
  0xee   :  { %v1555_v17 = vpop.eup %1554 }
  0xef   :  { %v1557_v18 = vpop.eup %1556  ;;  %v140_v19 = vadd.f32 1.0, %v1555_v17 }
  0xf0   :  { %v139_v20 = vadd.f32 1.0, %v1557_v18 }
  0xf1   :  { %1558 = vrcp.f32 %v140_v19 }
  0xf2   :  { %1560 = vrcp.f32 %v139_v20  ;;  %v296_v20 = vld [vmem:[%s2027_s3 + $0x68] sm:$0xff] }
  0xfb   :  { %v1559_v21 = vpop.eup %1558 }
  0xfc   :  { %v1561_v22 = vpop.eup %1560  ;;  %v1701_v23 = vmul.f32 %v1559_v21, %v114_v12  ;;  %v295_v21 = vld [vmem:[%s2027_s3 + $0x60] sm:$0xff] }
  0xfd   :  { %v1703_v24 = vmul.f32 %v1561_v22, %v109_v14  ;;  %v288_v14 = vld [vmem:[%s2027_s3 + $0x58] sm:$0xff] }
  0xff   :  { %v1457_v25 = vpack.c.bf16 %v1701_v23, %v1703_v24 }
 0x101   :  { %1458 = vmatprep.subr.bf16.mxu1 %v1457_v25 }
 0x102   :  { %1460 = vmatpush3.bf16.msra.mxu1 %v1457_v25 }
 0x103   :  { %1461 = vmatprep.subr.bf16.mxu1 %v1634_v39 }
 0x105   :  { %1348 = vmatmul.mubr.msk.f32.vlgmr.msra.gmra.mrb[0].mxu1 %vm159_vm1, %v156_v26 }
 0x106   :  { %1225 = vmatprep.mubr.msk.f32.mxu1 %vm159_vm1, %v320_v47  ;;  %v27_v47 = vld [vmem:[%s2025_s1 + $0x30] sm:$0xff] }
 0x1d8   :  { %v1349_v29 = vpop.f32.mrb[0].mxu1 }
 0x1d9   :  { %v238_v30 = vadd.f32 %v1349_v29, %v158_v27  ;;  %v232_v31 = vpop.f32.mrb[1].mxu1  ;;  %v304_v29 = vld [vmem:[%s2027_s3 + $0x78] sm:$0xff] }
 0x1da   :  { %v233_v32 = vadd.f32 %v232_v31, %v157_v28 }
 0x1db   :  { %v1224_v33 = vmul.f32 -1.442695, %v238_v30 }
 0x1dc   :  { %v1223_v34 = vmul.f32 -1.442695, %v233_v32 }
 0x1dd   :  { %1562 = vpow2.f32 %v1224_v33 }
 0x1de   :  { %1564 = vpow2.f32 %v1223_v34  ;;  %v312_v34 = vld [vmem:[%s2027_s3 + $0x88] sm:$0xff] }
 0x1e7   :  { %v1563_v35 = vpop.eup %1562 }
 0x1e8   :  { %v1565_v36 = vpop.eup %1564  ;;  %v248_v37 = vadd.f32 1.0, %v1563_v35 }
 0x1e9   :  { %v247_v38 = vadd.f32 1.0, %v1565_v36  ;;  %v311_v36 = vld [vmem:[%s2027_s3 + $0x80] sm:$0xff] }
 0x1ea   :  { %1566 = vrcp.f32 %v248_v37 }
 0x1eb   :  { %1568 = vrcp.f32 %v247_v38 }
 0x1f4   :  { %v1567_v40 = vpop.eup %1566 }
 0x1f5   :  { %v1569_v41 = vpop.eup %1568  ;;  %v1718_v42 = vmul.f32 %v1567_v40, %v238_v30  ;;  %v303_v30 = vld [vmem:[%s2027_s3 + $0x70] sm:$0xff] }
 0x1f6   :  { %v1720_v43 = vmul.f32 %v1569_v41, %v233_v32 }
 0x1f7   :  { %267 = vrot.lane.b32.xlu1 %v1718_v42, %s1635_s12 }
 0x1f8   :  { %257 = vrot.lane.b32.xlu0 %v1720_v43, %s1636_s13  ;;  %v1474_v44 = vpack.c.bf16 %v1718_v42, %v1720_v43 }
 0x1fb   :  { %265 = vrot.lane.b32.xlu1 %v1720_v43, %s1635_s12 }
 0x1fc   :  { %259 = vrot.lane.b32.xlu0 %v1718_v42, %s1636_s13 }
 0x1ff   :  { %275 = vrot.lane.b32.xlu1 %v1718_v42, %s1637_s14 }
 0x200   :  { %273 = vrot.lane.b32.xlu0 %v1720_v43, %s1637_s14 }
 0x203   :  { %283 = vrot.lane.b32.xlu1 %v1718_v42, %s1638_s17 }
 0x204   :  { %281 = vrot.lane.b32.xlu0 %v1720_v43, %s1638_s17 }
 0x207   :  { %291 = vrot.lane.b32.xlu1 %v1718_v42, %s1639_s20 }
 0x208   :  { %289 = vrot.lane.b32.xlu0 %v1720_v43, %s1639_s20 }
 0x20b   :  { %299 = vrot.lane.b32.xlu1 %v1718_v42, %s1640_s21 }
 0x20c   :  { %297 = vrot.lane.b32.xlu0 %v1720_v43, %s1640_s21 }
 0x20f   :  { %307 = vrot.lane.b32.xlu1 %v1718_v42, %s1641_s22 }
 0x210   :  { %305 = vrot.lane.b32.xlu0 %v1720_v43, %s1641_s22 }
 0x213   :  { %315 = vrot.lane.b32.xlu1 %v1718_v42, %s1642_s23 }
 0x214   :  { %313 = vrot.lane.b32.xlu0 %v1720_v43, %s1642_s23  ;;  %v319_v43 = vld [vmem:[%s2026_s2] sm:$0xff] }
 0x269   :  { %v268_v48 = vpop.permute.xlu1 %267 }
 0x26a   :  { %v258_v49 = vpop.permute.xlu0 %257  ;;  %v270_v0 = vmul.f32 %v268_v48, %v264_v57  ;;  %v1342_v48 = vpop.f32.mrb[2].mxu0 }
 0x26b   :  { %v261_v55 = vmul.f32 %v258_v49, %v255_v50  ;;  %v124_v49 = vadd.f32 %v1342_v48, %v28_v46  ;;  %v118_v50 = vpop.f32.mrb[3].mxu0  ;;  %v569_v46 = vld [vmem:[%s2027_s3 + $0x120] sm:$0xff] }
 0x26d   :  { %v266_v52 = vpop.permute.xlu1 %265 }
 0x26e   :  { %v260_v54 = vpop.permute.xlu0 %259  ;;  %v269_v58 = vmul.f32 %v266_v52, %v263_v53  ;;  %v1220_v52 = vmul.f32 -1.442695, %v124_v49 }
 0x26f   :  { %v262_v56 = vmul.f32 %v260_v54, %v256_v51  ;;  %v119_v51 = vadd.f32 %v118_v50, %v27_v47  ;;  %v570_v47 = vld [vmem:[%s2027_s3 + $0x128] sm:$0xff]  ;;  %v426_v50 = vld [vmem:[%s2025_s1 + $0x90] sm:$0xff] }
 0x270   :  { %v1465_v1 = vpack.c.bf16 %v270_v0, %v269_v58  ;;  %1570 = vpow2.f32 %v1220_v52  ;;  %v323_v0 = vld [vmem:[%s2025_s1 + $0x60] sm:$0xff]  ;;  %v1524_v48 = vpack.c.bf16 %v570_v47, %v569_v46  ;;  %v741_v46 = vld [vmem:[%s2025_s1 + $0xe8] sm:$0xff] }
 0x271   :  { %v1462_v59 = vpack.c.bf16 %v262_v56, %v261_v55  ;;  %v276_v60 = vpop.permute.xlu1 %275  ;;  %v1219_v53 = vmul.f32 -1.442695, %v119_v51  ;;  %v740_v47 = vld [vmem:[%s2025_s1 + $0xe0] sm:$0xff] }
 0x272   :  { %v274_v63 = vpop.permute.xlu0 %273  ;;  %v278_v2 = vmul.f32 %v276_v60, %v272_v61 }
 0x273   :  { %1463 = vmatpush1.bf16.msra.mxu1 %v1462_v59  ;;  %v277_v3 = vmul.f32 %v274_v63, %v271_v62  ;;  %1572 = vpow2.f32 %v1219_v53  ;;  %v422_v63 = vld [vmem:[%s2025_s1 + $0x70] sm:$0xff] }
 0x274   :  { %1464 = vmatprep.subr.bf16.mxu1 %v1634_v39  ;;  %1358 = vmatprep.mubr.msk.f32.mxu0 %vm29_vm0, %v422_v63 }
 0x275   :  { %v284_v4 = vpop.permute.xlu1 %283  ;;  %v1468_v8 = vpack.c.bf16 %v278_v2, %v277_v3 }
 0x276   :  { %v282_v7 = vpop.permute.xlu0 %281  ;;  %v286_v9 = vmul.f32 %v284_v4, %v280_v5  ;;  %v324_v4 = vld [vmem:[%s2025_s1 + $0x68] sm:$0xff] }
 0x277   :  { %1466 = vmatpush1.bf16.msra.mxu1 %v1465_v1  ;;  %v285_v10 = vmul.f32 %v282_v7, %v279_v6 }
 0x278   :  { %1467 = vmatprep.subr.bf16.mxu1 %v1634_v39 }
 0x279   :  { %v292_v11 = vpop.permute.xlu1 %291  ;;  %v1471_v13 = vpack.c.bf16 %v286_v9, %v285_v10 }
 0x27a   :  { %v290_v12 = vpop.permute.xlu0 %289  ;;  %v294_v18 = vmul.f32 %v292_v11, %v288_v14  ;;  %v1571_v54 = vpop.eup %1570 }
 0x27b   :  { %1469 = vmatpush1.bf16.msra.mxu1 %v1468_v8  ;;  %v293_v19 = vmul.f32 %v290_v12, %v287_v15  ;;  %v142_v56 = vadd.f32 1.0, %v1571_v54 }
 0x27c   :  { %1470 = vmatprep.subr.bf16.mxu1 %v1634_v39 }
 0x27d   :  { %v300_v16 = vpop.permute.xlu1 %299  ;;  %v1477_v26 = vpack.c.bf16 %v294_v18, %v293_v19  ;;  %v1573_v55 = vpop.eup %1572  ;;  %1574 = vrcp.f32 %v142_v56 }
 0x27e   :  { %v298_v17 = vpop.permute.xlu0 %297  ;;  %v302_v27 = vmul.f32 %v300_v16, %v296_v20  ;;  %v141_v57 = vadd.f32 1.0, %v1573_v55  ;;  %v429_v55 = vld [vmem:[%s2025_s1 + $0xa8] sm:$0xff] }
 0x27f   :  { %1472 = vmatpush1.bf16.msra.mxu1 %v1471_v13  ;;  %v301_v28 = vmul.f32 %v298_v17, %v295_v21  ;;  %v423_v21 = vld [vmem:[%s2025_s1 + $0x78] sm:$0xff] }
 0x280   :  { %1473 = vmatprep.subr.bf16.mxu1 %v1634_v39  ;;  %1576 = vrcp.f32 %v141_v57  ;;  %v428_v57 = vld [vmem:[%s2025_s1 + $0xa0] sm:$0xff] }
 0x281   :  { %v308_v22 = vpop.permute.xlu1 %307  ;;  %v1480_v31 = vpack.c.bf16 %v302_v27, %v301_v28  ;;  %v557_v27 = vld [vmem:[%s2027_s3 + $0xc0] sm:$0xff]  ;;  %v558_v28 = vld [vmem:[%s2027_s3 + $0xc8] sm:$0xff] }
 0x282   :  { %v306_v25 = vpop.permute.xlu0 %305  ;;  %v310_v32 = vmul.f32 %v308_v22, %v304_v29  ;;  %v424_v22 = vld [vmem:[%s2025_s1 + $0x80] sm:$0xff]  ;;  %v1500_v29 = vpack.c.bf16 %v558_v28, %v557_v27 }
 0x283   :  { %1475 = vmatpush1.bf16.msra.mxu1 %v1474_v44  ;;  %v309_v33 = vmul.f32 %v306_v25, %v303_v30  ;;  %v322_v44 = vld [vmem:[%s2026_s2 + $0x18] sm:$0xff]  ;;  %v559_v30 = vld [vmem:[%s2027_s3 + $0xd0] sm:$0xff]  ;;  %v866_v27 = vld [vmem:[%s2025_s1 + $0x100] sm:$0xff] }
 0x284   :  { %1476 = vmatprep.subr.bf16.mxu1 %v1634_v39  ;;  %v556_v25 = vld [vmem:[%s2027_s3 + $0xb8] sm:$0xff] }
 0x285   :  { %v316_v35 = vpop.permute.xlu1 %315  ;;  %v1483_v38 = vpack.c.bf16 %v310_v32, %v309_v33  ;;  %v561_v33 = vld [vmem:[%s2027_s3 + $0xe0] sm:$0xff] }
 0x286   :  { %v314_v37 = vpop.permute.xlu0 %313  ;;  %v318_v40 = vmul.f32 %v316_v35, %v312_v34  ;;  %v562_v34 = vld [vmem:[%s2027_s3 + $0xe8] sm:$0xff] }
 0x287   :  { %1478 = vmatpush1.bf16.msra.mxu1 %v1477_v26  ;;  %v317_v41 = vmul.f32 %v314_v37, %v311_v36  ;;  %v1575_v58 = vpop.eup %1574  ;;  %v1508_v35 = vpack.c.bf16 %v562_v34, %v561_v33  ;;  %v563_v36 = vld [vmem:[%s2027_s3 + $0xf0] sm:$0xff]  ;;  %v564_v37 = vld [vmem:[%s2027_s3 + $0xf8] sm:$0xff] }
 0x288   :  { %1479 = vmatprep.subr.bf16.mxu1 %v1634_v39  ;;  %v154_v60 = vmul.f32 %v1575_v58, %v124_v49  ;;  %v427_v49 = vld [vmem:[%s2025_s1 + $0x98] sm:$0xff] }
 0x289   :  { %v1486_v42 = vpack.c.bf16 %v318_v40, %v317_v41  ;;  %v565_v40 = vld [vmem:[%s2027_s3 + $0x100] sm:$0xff]  ;;  %v566_v41 = vld [vmem:[%s2027_s3 + $0x108] sm:$0xff] }
 0x28a   :  { %v1577_v59 = vpop.eup %1576 }
 0x28b   :  { %1481 = vmatpush1.bf16.msra.mxu1 %v1480_v31  ;;  %v153_v61 = vmul.f32 %v1577_v59, %v119_v51  ;;  %v560_v31 = vld [vmem:[%s2027_s3 + $0xd8] sm:$0xff] }
 0x28c   :  { %1482 = vmatprep.subr.bf16.mxu1 %v1634_v39  ;;  %v1504_v32 = vpack.c.bf16 %v560_v31, %v559_v30 }
 0x28d   :  { %v1492_v62 = vpack.c.bf16 %v154_v60, %v153_v61 }
 0x28f   :  { %1484 = vmatpush1.bf16.msra.mxu1 %v1483_v38  ;;  %v1512_v38 = vpack.c.bf16 %v564_v37, %v563_v36  ;;  %v738_v36 = vld [vmem:[%s2025_s1 + $0xd0] sm:$0xff]  ;;  %v739_v37 = vld [vmem:[%s2025_s1 + $0xd8] sm:$0xff] }
 0x290   :  { %1485 = vmatprep.subr.bf16.mxu1 %v1634_v39 }
 0x293   :  { %1487 = vmatpush1.bf16.msra.mxu1 %v1486_v42  ;;  %v1516_v42 = vpack.c.bf16 %v566_v41, %v565_v40  ;;  %v1000_v40 = vld [vmem:[%s2027_s3 + $0x98] sm:$0xff] }
 0x294   :  { %1528 = vmatprep.subr.bf16.mxu1 %v1634_v39 }
 0x296   :  { %396 = vmatmul.mubr.f32.vlgmr.msra.gmra.mrb[2].mxu1 %v319_v43  ;;  %v567_v43 = vld [vmem:[%s2027_s3 + $0x110] sm:$0xff] }
 0x297   :  { %1226 = vmatprep.mubr.msk.f32.mxu1 %vm159_vm1, %v322_v44  ;;  %v568_v44 = vld [vmem:[%s2027_s3 + $0x118] sm:$0xff] }
 0x29a   :  { %401 = vmatmul.mubr.f32.gmra.mrb[4].mxu1 %v321_v45  ;;  %v1520_v45 = vpack.c.bf16 %v568_v44, %v567_v43  ;;  %v867_v43 = vld [vmem:[%s2025_s1 + $0x108] sm:$0xff]  ;;  %v868_v44 = vld [vmem:[%s2025_s1 + $0x110] sm:$0xff] }
 0x369   :  { %v397_v1 = vpop.f32.mrb[2].mxu1 }
 0x36a   :  { %v398_v2 = vadd.f32 %v397_v1, %v323_v0  ;;  %v399_v3 = vpop.f32.mrb[3].mxu1 }
 0x36c   :  { %v1227_v5 = vmul.f32 -1.442695, %v398_v2 }
 0x36d   :  { %v402_v6 = vpop.f32.mrb[4].mxu1 }
 0x36e   :  { %1578 = vpow2.f32 %v1227_v5  ;;  %v403_v7 = vadd.f32 %v402_v6, %v324_v4  ;;  %v404_v8 = vpop.f32.mrb[5].mxu1 }
 0x370   :  { %v1228_v9 = vmul.f32 -1.442695, %v403_v7 }
 0x372   :  { %1580 = vpow2.f32 %v1228_v9 }
 0x378   :  { %v1579_v10 = vpop.eup %1578 }
 0x379   :  { %v412_v11 = vadd.f32 1.0, %v1579_v10 }
 0x37b   :  { %1582 = vrcp.f32 %v412_v11 }
 0x37c   :  { %v1581_v12 = vpop.eup %1580 }
 0x37d   :  { %v413_v13 = vadd.f32 1.0, %v1581_v12 }
 0x37f   :  { %1584 = vrcp.f32 %v413_v13 }
 0x385   :  { %v1583_v14 = vpop.eup %1582 }
 0x386   :  { %v418_v15 = vmul.f32 %v1583_v14, %v398_v2 }
 0x388   :  { %v420_v18 = vadd.f32 %v418_v15, %v1703_v24  ;;  %v555_v24 = vld [vmem:[%s2027_s3 + $0xb0] sm:$0xff] }
 0x389   :  { %v1585_v16 = vpop.eup %1584  ;;  %v1496_v26 = vpack.c.bf16 %v556_v25, %v555_v24  ;;  %v656_v24 = vld [vmem:[%s2025_s1 + $0xb0] sm:$0xff]  ;;  %v736_v25 = vld [vmem:[%s2025_s1 + $0xc0] sm:$0xff] }
 0x38a   :  { %v419_v17 = vmul.f32 %v1585_v16, %v403_v7 }
 0x38c   :  { %v421_v19 = vadd.f32 %v419_v17, %v1701_v23  ;;  %v425_v23 = vld [vmem:[%s2025_s1 + $0x88] sm:$0xff]  ;;  %v1644_v17 = vmov 0.0  }
 0x38d   :  { %1410 = vmatprep.mubr.msk.f32.mxu1 %vm1643_vm2, %v1644_v17  ;;  %v871_v17 = vld [vmem:[%s2025_s1 + $0x128] sm:$0xff] }
 0x38e   :  { %v1488_v20 = vpack.c.bf16 %v421_v19, %v420_v18 }
 0x390   :  { %1489 = vmatprep.subr.bf16.mxu0 %v1488_v20 }
 0x391   :  { %1491 = vmatpush3.bf16.msra.mxu0 %v1488_v20 }
 0x392   :  { %1493 = vmatprep.subr.bf16.mxu0 %v1492_v62 }
 0x395   :  { %1495 = vmatpush3.bf16.msra.mxu0 %v1492_v62 }
 0x396   :  { %1497 = vmatprep.subr.bf16.mxu0 %v1496_v26 }
 0x398   :  { %1359 = vmatmul.mubr.msk.f32.vlgmr.msra.gmra.mrb[4].mxu0 %vm29_vm0, %v423_v21 }
 0x399   :  { %1361 = vmatprep.mubr.msk.f32.mxu0 %vm29_vm0, %v424_v22  ;;  %1499 = vmatpush3.bf16.msra.mxu0 %v1496_v26  ;;  %v657_v26 = vld [vmem:[%s2025_s1 + $0xb8] sm:$0xff] }
 0x39a   :  { %1501 = vmatprep.subr.bf16.mxu0 %v1500_v29 }
 0x39c   :  { %1362 = vmatmul.mubr.msk.f32.gmra.mrb[6].mxu0 %vm29_vm0, %v425_v23 }
 0x39d   :  { %1503 = vmatpush3.bf16.msra.mxu0 %v1500_v29 }
 0x39e   :  { %1505 = vmatprep.subr.bf16.mxu0 %v1504_v32 }
 0x3a1   :  { %1507 = vmatpush3.bf16.msra.mxu0 %v1504_v32 }
 0x3a2   :  { %1509 = vmatprep.subr.bf16.mxu0 %v1508_v35 }
 0x3a5   :  { %1511 = vmatpush3.bf16.msra.mxu0 %v1508_v35  ;;  %v737_v35 = vld [vmem:[%s2025_s1 + $0xc8] sm:$0xff] }
 0x3a6   :  { %1513 = vmatprep.subr.bf16.mxu0 %v1512_v38 }
 0x3a9   :  { %1515 = vmatpush3.bf16.msra.mxu0 %v1512_v38  ;;  %v999_v38 = vld [vmem:[%s2027_s3 + $0x90] sm:$0xff] }
 0x3aa   :  { %1517 = vmatprep.subr.bf16.mxu0 %v1516_v42  ;;  %v1534_v41 = vpack.c.bf16 %v1000_v40, %v999_v38 }
 0x3ad   :  { %1519 = vmatpush3.bf16.msra.mxu0 %v1516_v42 }
 0x3ae   :  { %1521 = vmatprep.subr.bf16.mxu0 %v1520_v45 }
 0x3b1   :  { %1523 = vmatpush3.bf16.msra.mxu0 %v1520_v45  ;;  %v869_v45 = vld [vmem:[%s2025_s1 + $0x118] sm:$0xff] }
 0x3b2   :  { %1525 = vmatprep.subr.bf16.mxu0 %v1524_v48 }
 0x3b5   :  { %1527 = vmatpush3.bf16.msra.mxu0 %v1524_v48 }
 0x46b   :  { %v1360_v51 = vpop.f32.mrb[4].mxu0 }
 0x46c   :  { %v514_v52 = vadd.f32 %v1360_v51, %v427_v49  ;;  %v508_v53 = vpop.f32.mrb[5].mxu0 }
 0x46d   :  { %v509_v54 = vadd.f32 %v508_v53, %v426_v50 }
 0x46e   :  { %v1234_v56 = vmul.f32 -1.442695, %v514_v52 }
 0x46f   :  { %v1233_v58 = vmul.f32 -1.442695, %v509_v54  ;;  %v1363_v59 = vpop.f32.mrb[6].mxu0 }
 0x470   :  { %1586 = vpow2.f32 %v1234_v56  ;;  %v524_v60 = vadd.f32 %v1363_v59, %v429_v55  ;;  %v518_v61 = vpop.f32.mrb[7].mxu0 }
 0x471   :  { %1588 = vpow2.f32 %v1233_v58  ;;  %v519_v62 = vadd.f32 %v518_v61, %v428_v57 }
 0x472   :  { %v1236_v63 = vmul.f32 -1.442695, %v524_v60 }
 0x473   :  { %v1235_v0 = vmul.f32 -1.442695, %v519_v62 }
 0x474   :  { %1590 = vpow2.f32 %v1236_v63  ;;  %v1099_v63 = vld [vmem:[%s2027_s3 + $0xa8] sm:$0xff] }
 0x475   :  { %1592 = vpow2.f32 %v1235_v0 }
 0x47a   :  { %v1587_v1 = vpop.eup %1586 }
 0x47b   :  { %v1589_v2 = vpop.eup %1588  ;;  %v540_v3 = vadd.f32 1.0, %v1587_v1 }
 0x47c   :  { %v539_v4 = vadd.f32 1.0, %v1589_v2 }
 0x47d   :  { %1594 = vrcp.f32 %v540_v3 }
 0x47e   :  { %v1591_v5 = vpop.eup %1590  ;;  %1596 = vrcp.f32 %v539_v4 }
 0x47f   :  { %v1593_v6 = vpop.eup %1592  ;;  %v542_v7 = vadd.f32 1.0, %v1591_v5 }
 0x480   :  { %v541_v8 = vadd.f32 1.0, %v1593_v6 }
 0x481   :  { %1598 = vrcp.f32 %v542_v7 }
 0x482   :  { %1600 = vrcp.f32 %v541_v8 }
 0x487   :  { %v1595_v9 = vpop.eup %1594 }
 0x488   :  { %v1597_v10 = vpop.eup %1596  ;;  %v1914_v12 = vmul.f32 %v1595_v9, %v514_v52  ;;  %v743_v52 = vld [vmem:[%s2025_s1 + $0xf8] sm:$0xff] }
 0x489   :  { %v1912_v11 = vmul.f32 %v1597_v10, %v509_v54  ;;  %v742_v54 = vld [vmem:[%s2025_s1 + $0xf0] sm:$0xff] }
 0x48b   :  { %v1599_v13 = vpop.eup %1598  ;;  %1396 = vmatprep.mubr.f32.mxu0 %v1912_v11 }
 0x48c   :  { %v1601_v14 = vpop.eup %1600  ;;  %1397 = vmatmul.mubr.f32.vlgmr.msra.gmra.mrb[8].mxu0 %v1914_v12  ;;  %v1920_v16 = vmul.f32 %v1599_v13, %v524_v60 }
 0x48d   :  { %v1918_v15 = vmul.f32 %v1601_v14, %v519_v62  ;;  %v1098_v62 = vld [vmem:[%s2027_s3 + $0xa0] sm:$0xff] }
 0x48e   :  { %v1538_v0 = vpack.c.bf16 %v1099_v63, %v1098_v62 }
 0x48f   :  { %1399 = vmatprep.mubr.f32.mxu0 %v1918_v15 }
 0x490   :  { %1400 = vmatmul.mubr.f32.gmra.mrb[10].mxu0 %v1920_v16 }
 0x491   :  { %1423 = vmatprep.mubr.msk.f32.mxu0 %vm744_vm3, %v866_v27 }
 0x55f   :  { %v1398_v18 = vpop.f32.mrb[8].mxu0 }
 0x560   :  { %v637_v19 = vpop.f32.mrb[9].mxu0 }
 0x561   :  { %v1529_v20 = vpack.c.bf16 %v1398_v18, %v637_v19  ;;  %v870_v18 = vld [vmem:[%s2025_s1 + $0x120] sm:$0xff] }
 0x563   :  { %v1401_v21 = vpop.f32.mrb[10].mxu0  ;;  %1530 = vmatpush3.bf16.msra.mxu1 %v1529_v20 }
 0x564   :  { %v647_v22 = vpop.f32.mrb[11].mxu0  ;;  %1531 = vmatprep.subr.bf16.mxu1 %v1634_v39 }
 0x565   :  { %v1532_v23 = vpack.c.bf16 %v1401_v21, %v647_v22 }
 0x567   :  { %1533 = vmatpush3.bf16.msra.mxu1 %v1532_v23  ;;  %v873_v23 = vld [vmem:[%s2025_s1 + $0x138] sm:$0xff] }
 0x56a   :  { %1411 = vmatmul.mubr.msk.f32.vlgmr.msra.gmra.mrb[6].mxu1 %vm29_vm0, %v656_v24 }
 0x56b   :  { %1415 = vmatprep.mubr.msk.f32.mxu1 %vm744_vm3, %v736_v25  ;;  %v872_v25 = vld [vmem:[%s2025_s1 + $0x130] sm:$0xff] }
 0x63d   :  { %v727_v39 = vpop.f32.mrb[6].mxu1 }
 0x63e   :  { %v728_v28 = vadd.f32 %v727_v39, %v657_v26  ;;  %v1412_v29 = vpop.f32.mrb[7].mxu1 }
 0x640   :  { %v731_v30 = vadd.f32 3.0, %v728_v28 }
 0x642   :  { %v732_v31 = vmax.f32 %v731_v30, 0.0 }
 0x644   :  { %v733_v32 = vmin.f32 %v732_v31, 6.0 }
 0x646   :  { %v734_v33 = vmul.f32 %v733_v32, %v728_v28 }
 0x648   :  { %v735_v34 = vmul.f32 0.16666667, %v734_v33 }
 0x64a   :  { %875 = vrot.lane.b32.xlu0 %v735_v34, %s1645_s19  ;;  %1413 = vmatprep.subr.mxu1 %v735_v34 }
 0x64b   :  { %1414 = vmatpush3.msra.mxu1 %v735_v34 }
 0x64c   :  { %1416 = vmatmul.mubr.msk.f32.vlgmr.msra.gmra.mrb[8].mxu1 %vm744_vm3, %v737_v35  ;;  %1535 = vmatprep.subr.bf16.mxu1 %v1534_v41 }
 0x64d   :  { %1418 = vmatprep.mubr.msk.f32.mxu1 %vm744_vm3, %v738_v36  ;;  %1537 = vmatpush3.bf16.msra.mxu1 %v1534_v41 }
 0x650   :  { %1419 = vmatmul.mubr.msk.f32.gmra.mrb[10].mxu1 %vm744_vm3, %v739_v37 }
 0x6bc   :  { %v876_v42 = vpop.permute.xlu0 %875 }
 0x6bd   :  { %1421 = vmatprep.subr.mxu0 %v876_v42 }
 0x6be   :  { %1422 = vmatpush3.msra.mxu0 %v876_v42 }
 0x6bf   :  { %1424 = vmatmul.mubr.msk.f32.vlgmr.msra.gmra.mrb[12].mxu0 %vm744_vm3, %v867_v43  ;;  %1539 = vmatprep.subr.bf16.mxu0 %v1538_v0 }
 0x6c0   :  { %1426 = vmatprep.mubr.msk.f32.mxu0 %vm744_vm3, %v868_v44  ;;  %1541 = vmatpush3.bf16.msra.mxu0 %v1538_v0 }
 0x6c3   :  { %1427 = vmatmul.mubr.msk.f32.gmra.mrb[14].mxu0 %vm744_vm3, %v869_v45 }
 0x71f   :  { %v1417_v48 = vpop.f32.mrb[8].mxu1 }
 0x720   :  { %v829_v49 = vadd.f32 %v1417_v48, %v741_v46  ;;  %v823_v50 = vpop.f32.mrb[9].mxu1 }
 0x721   :  { %v824_v51 = vadd.f32 %v823_v50, %v740_v47 }
 0x722   :  { %v1243_v53 = vmul.f32 -1.442695, %v829_v49 }
 0x723   :  { %v1242_v55 = vmul.f32 -1.442695, %v824_v51  ;;  %v1420_v56 = vpop.f32.mrb[10].mxu1 }
 0x724   :  { %1602 = vpow2.f32 %v1243_v53  ;;  %v839_v57 = vadd.f32 %v1420_v56, %v743_v52  ;;  %v833_v58 = vpop.f32.mrb[11].mxu1 }
 0x725   :  { %1604 = vpow2.f32 %v1242_v55  ;;  %v834_v59 = vadd.f32 %v833_v58, %v742_v54 }
 0x726   :  { %v1245_v60 = vmul.f32 -1.442695, %v839_v57 }
 0x727   :  { %v1244_v61 = vmul.f32 -1.442695, %v834_v59 }
 0x728   :  { %1606 = vpow2.f32 %v1245_v60 }
 0x729   :  { %1608 = vpow2.f32 %v1244_v61 }
 0x72e   :  { %v1603_v1 = vpop.eup %1602 }
 0x72f   :  { %v1605_v2 = vpop.eup %1604  ;;  %v855_v3 = vadd.f32 1.0, %v1603_v1 }
 0x730   :  { %v854_v4 = vadd.f32 1.0, %v1605_v2 }
 0x731   :  { %1610 = vrcp.f32 %v855_v3 }
 0x732   :  { %v1607_v5 = vpop.eup %1606  ;;  %1612 = vrcp.f32 %v854_v4 }
 0x733   :  { %v1609_v6 = vpop.eup %1608  ;;  %v857_v7 = vadd.f32 1.0, %v1607_v5 }
 0x734   :  { %v856_v8 = vadd.f32 1.0, %v1609_v6 }
 0x735   :  { %1614 = vrcp.f32 %v857_v7 }
 0x736   :  { %1616 = vrcp.f32 %v856_v8 }
 0x73b   :  { %v1611_v9 = vpop.eup %1610 }
 0x73c   :  { %v1613_v10 = vpop.eup %1612 }
 0x73d   :  { %1433 = vmatprep.mubr.msk.f32.mxu1 %vm159_vm1, %v1613_v10 }
 0x73e   :  { %1434 = vmatmul.mubr.msk.f32.vlgmr.msra.gmra.mrb[12].mxu1 %vm159_vm1, %v1611_v9 }
 0x73f   :  { %v1615_v13 = vpop.eup %1614 }
 0x740   :  { %v1617_v14 = vpop.eup %1616 }
 0x741   :  { %1436 = vmatprep.mubr.msk.f32.mxu1 %vm159_vm1, %v1617_v14 }
 0x742   :  { %1437 = vmatmul.mubr.msk.f32.gmra.mrb[14].mxu1 %vm159_vm1, %v1615_v13 }
 0x792   :  { %v1425_v19 = vpop.f32.mrb[12].mxu0 }
 0x793   :  { %v962_v20 = vadd.f32 %v1425_v19, %v871_v17  ;;  %v956_v21 = vpop.f32.mrb[13].mxu0 }
 0x794   :  { %v957_v22 = vadd.f32 %v956_v21, %v870_v18 }
 0x795   :  { %v1251_v24 = vmul.f32 -1.442695, %v962_v20 }
 0x796   :  { %v1250_v26 = vmul.f32 -1.442695, %v957_v22  ;;  %v1428_v39 = vpop.f32.mrb[14].mxu0 }
 0x797   :  { %1618 = vpow2.f32 %v1251_v24  ;;  %v972_v27 = vadd.f32 %v1428_v39, %v873_v23  ;;  %v966_v28 = vpop.f32.mrb[15].mxu0 }
 0x798   :  { %1620 = vpow2.f32 %v1250_v26  ;;  %v967_v29 = vadd.f32 %v966_v28, %v872_v25 }
 0x799   :  { %v1253_v30 = vmul.f32 -1.442695, %v972_v27 }
 0x79a   :  { %v1252_v31 = vmul.f32 -1.442695, %v967_v29 }
 0x79b   :  { %1622 = vpow2.f32 %v1253_v30 }
 0x79c   :  { %1624 = vpow2.f32 %v1252_v31 }
 0x7a1   :  { %v1619_v32 = vpop.eup %1618 }
 0x7a2   :  { %v1621_v33 = vpop.eup %1620  ;;  %v988_v34 = vadd.f32 1.0, %v1619_v32 }
 0x7a3   :  { %v987_v35 = vadd.f32 1.0, %v1621_v33 }
 0x7a5   :  { %v1623_v36 = vpop.eup %1622  ;;  %1626 = vrcp.f32 %v987_v35 }
 0x7a6   :  { %v1625_v37 = vpop.eup %1624  ;;  %1628 = vrcp.f32 %v988_v34  ;;  %v990_v38 = vadd.f32 1.0, %v1623_v36 }
 0x7a7   :  { %v989_v40 = vadd.f32 1.0, %v1625_v37 }
 0x7a9   :  { %1630 = vrcp.f32 %v989_v40 }
 0x7aa   :  { %1632 = vrcp.f32 %v990_v38 }
 0x7af   :  { %v1627_v41 = vpop.eup %1626 }
 0x7b0   :  { %v1629_v42 = vpop.eup %1628  ;;  %1443 = vmatprep.mubr.msk.f32.mxu0 %vm159_vm1, %v1627_v41 }
 0x7b1   :  { %1444 = vmatmul.mubr.msk.f32.vlgmr.msra.gmra.mrb[16].mxu0 %vm159_vm1, %v1629_v42 }
 0x7b3   :  { %v1631_v43 = vpop.eup %1630 }
 0x7b4   :  { %v1633_v44 = vpop.eup %1632  ;;  %1446 = vmatprep.mubr.msk.f32.mxu0 %vm159_vm1, %v1631_v43 }
 0x7b5   :  { %1447 = vmatmul.mubr.msk.f32.gmra.mrb[18].mxu0 %vm159_vm1, %v1633_v44 }
 0x811   :  { %v1435_v45 = vpop.f32.mrb[12].mxu1 }
 0x812   :  { %v1079_v46 = vpop.f32.mrb[13].mxu1  ;;  %v1198_v49 = vmul.f32 %v1435_v45, %v1914_v12 }
 0x813   :  { %v1197_v50 = vmul.f32 %v1079_v46, %v1912_v11 }
 0x815   :  { %v1438_v47 = vpop.f32.mrb[14].mxu1 }
 0x816   :  { %v1089_v48 = vpop.f32.mrb[15].mxu1  ;;  %v1200_v55 = vmul.f32 %v1438_v47, %v1920_v16 }
 0x817   :  { %v1199_v56 = vmul.f32 %v1089_v48, %v1918_v15 }
 0x884   :  { %v1445_v51 = vpop.f32.mrb[16].mxu0 }
 0x885   :  { %v1202_v52 = vmul.f32 %v1445_v51, %v1198_v49  ;;  %v1178_v53 = vpop.f32.mrb[17].mxu0 }
 0x886   :  { %v1201_v54 = vmul.f32 %v1197_v50, %v1178_v53 }
 0x887   :  { %1206 = vst [vmem:[%s2028_s4 + $0x8] sm:$0xff] %v1202_v52 }
 0x888   :  { %1205 = vst [vmem:[%s2028_s4] sm:$0xff] %v1201_v54  ;;  %v1448_v57 = vpop.f32.mrb[18].mxu0 }
 0x889   :  { %v1204_v12 = vmul.f32 %v1448_v57, %v1200_v55  ;;  %v1188_v58 = vpop.f32.mrb[19].mxu0 }
 0x88a   :  { %v1203_v11 = vmul.f32 %v1199_v56, %v1188_v58 }
 0x88b   :  { %1208 = vst [vmem:[%s2028_s4 + $0x18] sm:$0xff] %v1204_v12 }
 0x88c   :  { %1207 = vst [vmem:[%s2028_s4 + $0x10] sm:$0xff] %v1203_v11 }

</bundles_post_ra>
